<compile_context>
chip_gen: v7x
topology: tpu7x:2x2x1
jax: 0.10.0
libtpu: 0.0.40
codegen_flags: <defaults>
</compile_context>

<pallas_src>
import functools
import math

import jax
import jax.numpy as jnp
from jax import lax
from jax.experimental import pallas as pl
from jax.experimental.pallas import tpu as pltpu


def _cdiv(a, b):
    return -(-a // b)


def _round_up(a, b):
    return _cdiv(a, b) * b


def _vmem_limit_bytes():
    """Generation-aware scoped-VMEM budget (defensive hardware query)."""
    try:
        cap = int(getattr(pltpu.get_tpu_info(), "vmem_capacity_bytes", 0))
        if cap > 0:
            return (96 << 20) if cap > (64 << 20) else (44 << 20)
    except Exception:
        pass
    try:
        kind = jax.devices()[0].device_kind.lower()
    except Exception:
        kind = ""
    # v5e / v6e have 128 MiB physical VMEM per core; anything else (v7x /
    # unknown) gets the conservative 64 MiB assumption.
    big = ("v5" in kind) or ("v6" in kind)
    return (96 << 20) if big else (44 << 20)


def _res_block_kernel(x_ref, halo_ref, w1_ref, b1_ref, w2_ref, b2_ref, o_ref, *,
                      dilation, t_tile, seq_len, halo_per_row, compute_dtype):
    d = dilation
    x = x_ref[0]                                      # (Cin, Tt) NCL tile, f32
    cin, tt = x.shape

    # ReLU before conv1.  For a ragged final tile, zero columns past the true
    # sequence end so they behave exactly like the conv's zero padding (the
    # residual's garbage columns there are dropped by the masked store).
    h = jnp.maximum(x, 0.0)
    if seq_len % t_tile != 0:
        t0 = pl.program_id(1) * t_tile
        lane = lax.broadcasted_iota(jnp.int32, (cin, tt), 1)
        h = jnp.where(t0 + lane < seq_len, h, 0.0)

    # Halo columns (d each side of the tile); zero-filled at array boundaries.
    if halo_per_row:
        halo = halo_ref[pl.program_id(1)]             # (Cin, 2*d)
    else:
        halo = halo_ref[0]                            # (Cin, 2*d)
    halo = jnp.maximum(halo, 0.0)
    h_left, h_right = halo[:, :d], halo[:, d:]

    # Fused 3-tap operand: channel-stack the shifted views -> one MXU matmul
    # with K = 3*Cin.  (The lane-misaligned slice+concat is kept: splicing the
    # halo into a pltpu.roll result would need a full-width halo plane, which
    # costs more than it saves while the kernel is HBM/overhead-bound.)
    shift_m = jnp.concatenate([h_left, h[:, :tt - d]], axis=1)    # x[t - d]
    shift_p = jnp.concatenate([h[:, d:], h_right], axis=1)        # x[t + d]
    hs = jnp.concatenate([shift_m, h, shift_p], axis=0)           # (3*Cin, Tt)
    hs = hs.astype(compute_dtype)

    # Conv1d(n_in->n_state, k=3, dilation=d): (Cstate,3Cin)@(3Cin,Tt), f32 acc.
    y1 = jnp.dot(w1_ref[...], hs, preferred_element_type=jnp.float32)
    y1 = jnp.maximum(y1 + b1_ref[...], 0.0).astype(compute_dtype)

    # Conv1d(n_state->n_in, k=1); res_scale already folded into w2/b2.
    y2 = jnp.dot(w2_ref[...], y1, preferred_element_type=jnp.float32)

    o_ref[0] = (x + (y2 + b2_ref[...])).astype(o_ref.dtype)


def res_conv1d_block(x_ncl, w1_pt, b1, w2_pt, b2, *, dilation=1, res_scale=1.0,
                     t_tile=None, halo_per_row=None, compute_dtype=jnp.bfloat16):
    """ResConv1DBlock forward (noise_injection=False).

    x_ncl : (N, n_in, T)        float32, PyTorch NCL layout
    w1_pt : (n_state, n_in, 3)  Conv1d(n_in, n_state, 3, dilation=d) weight
    b1    : (n_state,)
    w2_pt : (n_in, n_state, 1)  Conv1d(n_state, n_in, 1) weight
    b2    : (n_in,)
    """
    N, cin, T = x_ncl.shape
    cstate = w1_pt.shape[0]
    d = int(dilation)

    # ---- time-tile sizing: multiple of 128, >= dilation, sized to the VMEM
    #      budget of this TPU generation, split so the grid has >= 2 steps. ---
    vmem_limit = _vmem_limit_bytes()
    cin_p, cst_p = _round_up(cin, 8), _round_up(cstate, 8)
    bytes_per_col = 56 * cin_p + 16 * cst_p          # pipelined I/O + temps per lane
    min_tile = max(128, _round_up(d, 128))
    if t_tile is None:
        t_tile = (int(vmem_limit * 0.6) // bytes_per_col) // 128 * 128
        t_tile = min(max(t_tile, 128), 16384)
    else:
        t_tile = _round_up(int(t_tile), 128)
    t_tile = max(min_tile, min(t_tile, _round_up(T, 128)))
    num_t = _cdiv(T, t_tile)
    if N * num_t < 2:                                 # keep both cores busy (v7x)
        cand = max(min_tile, _round_up(_cdiv(T, 2), 128))
        if cand < t_tile:
            t_tile, num_t = cand, _cdiv(T, cand)

    # ---- per-tile halos (d columns each side); boundary halos are the conv's
    #      zero padding.  Tiny gather -> (N*num_t, cin, 2*d). -------------------
    t_starts = jnp.arange(num_t, dtype=jnp.int32) * t_tile
    offs = jnp.arange(d, dtype=jnp.int32)
    idx = jnp.concatenate([t_starts[:, None] - d + offs[None, :],
                           t_starts[:, None] + t_tile + offs[None, :]], axis=1)
    valid = (idx >= 0) & (idx < T)                    # (num_t, 2*d)
    gath = jnp.take(x_ncl, jnp.clip(idx, 0, T - 1).reshape(-1), axis=2)
    halos = gath.reshape(N, cin, num_t, 2 * d) * valid.astype(x_ncl.dtype)[None, None]
    halos = jnp.transpose(halos, (0, 2, 1, 3)).reshape(N * num_t, cin, 2 * d)

    if halo_per_row is None:                          # one DMA per batch row if small
        halo_per_row = num_t * cin_p * 2 * d * 4 <= (512 << 10)
    if halo_per_row:
        halo_spec = pl.BlockSpec((num_t, cin, 2 * d), lambda b, t: (b, 0, 0))
    else:
        halo_spec = pl.BlockSpec((1, cin, 2 * d), lambda b, t: (b * num_t + t, 0, 0))

    # ---- weights: fused 3-tap weight (K = 3*Cin), res_scale folded into conv2,
    #      matmul operands pre-cast to bf16 (accumulation stays f32). ----------
    w1f = jnp.transpose(w1_pt, (0, 2, 1)).reshape(cstate, 3 * cin).astype(compute_dtype)
    w2m = (float(res_scale) * w2_pt[:, :, 0]).astype(compute_dtype)   # (Cin, Cstate)
    b1c = b1.reshape(cstate, 1).astype(jnp.float32)
    b2c = (float(res_scale) * b2).reshape(cin, 1).astype(jnp.float32)

    kernel = functools.partial(
        _res_block_kernel, dilation=d, t_tile=t_tile, seq_len=T,
        halo_per_row=bool(halo_per_row), compute_dtype=compute_dtype)

    return pl.pallas_call(
        kernel,
        out_shape=jax.ShapeDtypeStruct((N, cin, T), x_ncl.dtype),
        grid_spec=pltpu.PrefetchScalarGridSpec(
            num_scalar_prefetch=0,
            grid=(N, num_t),
            in_specs=[
                pl.BlockSpec((1, cin, t_tile), lambda b, t: (b, 0, t)),   # x tile
                halo_spec,                                                # halos
                pl.BlockSpec((cstate, 3 * cin), lambda b, t: (0, 0)),     # w1 (resident)
                pl.BlockSpec((cstate, 1), lambda b, t: (0, 0)),           # b1
                pl.BlockSpec((cin, cstate), lambda b, t: (0, 0)),         # w2 (scaled)
                pl.BlockSpec((cin, 1), lambda b, t: (0, 0)),              # b2 (scaled)
            ],
            out_specs=pl.BlockSpec((1, cin, t_tile), lambda b, t: (b, 0, t)),
        ),
        compiler_params=pltpu.CompilerParams(
            dimension_semantics=("parallel", "parallel"),
            vmem_limit_bytes=vmem_limit),
    )(x_ncl, halos, w1f, b1c, w2m, b2c)


def _reference(x_ncl, w1_pt, b1, w2_pt, b2, *, dilation=1, res_scale=1.0):
    h = jax.nn.relu(x_ncl)
    y = lax.conv_general_dilated(
        h, w1_pt, window_strides=(1,), padding=[(dilation, dilation)],
        rhs_dilation=(dilation,), dimension_numbers=("NCH", "OIH", "NCH"))
    y = jax.nn.relu(y + b1[None, :, None])
    y = lax.conv_general_dilated(
        y, w2_pt, window_strides=(1,), padding=[(0, 0)],
        dimension_numbers=("NCH", "OIH", "NCH"))
    y = y + b2[None, :, None]
    return x_ncl + res_scale * y


if __name__ == "__main__":
    key = jax.random.PRNGKey(0)
    ok = True

    # (N, n_in, n_state, T, dilation, res_scale, t_tile, halo_per_row)
    configs = [
        (2, 8, 32, 256, 1, 1.0, 128, None),                       # aligned tiles, d=1
        (2, 8, 32, 200, 3, 1.0 / math.sqrt(2.0), 128, False),     # ragged T, per-tile halos
        (1, 16, 64, 384, 9, 0.5, None, None),                     # auto tile + core split, d=9
    ]
    for (N, n_in, n_state, T, dil, rs, tt, hpr) in configs:
        key, kx, kw1, kb1, kw2, kb2 = jax.random.split(key, 6)
        x = jax.random.normal(kx, (N, n_in, T), dtype=jnp.float32)
        w1 = 0.1 * jax.random.normal(kw1, (n_state, n_in, 3), dtype=jnp.float32)
        b1 = 0.1 * jax.random.normal(kb1, (n_state,), dtype=jnp.float32)
        w2 = 0.1 * jax.random.normal(kw2, (n_in, n_state, 1), dtype=jnp.float32)
        b2 = 0.1 * jax.random.normal(kb2, (n_in,), dtype=jnp.float32)

        out = res_conv1d_block(x, w1, b1, w2, b2, dilation=dil, res_scale=rs,
                               t_tile=tt, halo_per_row=hpr)
        out = jax.block_until_ready(out)
        ref = _reference(x, w1, b1, w2, b2, dilation=dil, res_scale=rs)

        ok &= bool(out.shape == (N, n_in, T))
        # bf16 matmul operands with f32 accumulation -> slightly looser tolerance.
        ok &= bool(jnp.allclose(out, ref, atol=2e-2, rtol=2e-2))

    if ok:
        print("KERNEL_OK")
    else:
        raise SystemExit("mismatch vs reference")
</pallas_src>

<mosaic_0001>
module attributes {stable_mosaic.version = 11 : i64} {
  func.func @_res_block_kernel(%arg0: i32, %arg1: i32, %arg2: memref<1x8x128xf32, #tpu.memory_space<vmem>>, %arg3: memref<2x8x2xf32, #tpu.memory_space<vmem>>, %arg4: memref<32x24xbf16, #tpu.memory_space<vmem>>, %arg5: memref<32x1xf32, #tpu.memory_space<vmem>>, %arg6: memref<8x32xbf16, #tpu.memory_space<vmem>>, %arg7: memref<8x1xf32, #tpu.memory_space<vmem>>, %arg8: memref<1x8x128xf32, #tpu.memory_space<vmem>>) attributes {dimension_semantics = [#tpu.dimension_semantics<parallel>, #tpu.dimension_semantics<parallel>], iteration_bounds = array<i64: 2, 2>, scalar_prefetch = 0 : i64, scratch_operands = 0 : i64, tpu.core_type = #tpu.core_type<tc>, window_params = [{transform_indices = @transform_0, window_bounds = array<i64: 1, 8, 128>}, {transform_indices = @transform_1, window_bounds = array<i64: 2, 8, 2>}, {pipeline_mode = #tpu.pipeline_mode<synchronous>, transform_indices = @transform_2, window_bounds = array<i64: 32, 24>}, {pipeline_mode = #tpu.pipeline_mode<synchronous>, transform_indices = @transform_3, window_bounds = array<i64: 32, 1>}, {pipeline_mode = #tpu.pipeline_mode<synchronous>, transform_indices = @transform_4, window_bounds = array<i64: 8, 32>}, {pipeline_mode = #tpu.pipeline_mode<synchronous>, transform_indices = @transform_5, window_bounds = array<i64: 8, 1>}, {transform_indices = @transform_6, window_bounds = array<i64: 1, 8, 128>}]} {
    %c0 = arith.constant 0 : index
    %c0_0 = arith.constant 0 : index
    %c0_1 = arith.constant 0 : index
    %0 = vector.load %arg2[%c0, %c0_0, %c0_1] : memref<1x8x128xf32, #tpu.memory_space<vmem>>, vector<1x8x128xf32>
    %1 = vector.shape_cast %0 : vector<1x8x128xf32> to vector<8x128xf32>
    %cst = arith.constant 0.000000e+00 : f32
    %2 = vector.broadcast %cst : f32 to vector<8x128xf32>
    %3 = arith.maximumf %1, %2 : vector<8x128xf32>
    %4 = arith.index_cast %arg1 : i32 to index
    %c0_2 = arith.constant 0 : index
    %c0_3 = arith.constant 0 : index
    %5 = vector.load %arg3[%4, %c0_2, %c0_3] : memref<2x8x2xf32, #tpu.memory_space<vmem>>, vector<1x8x2xf32>
    %6 = vector.shape_cast %5 : vector<1x8x2xf32> to vector<8x2xf32>
    %cst_4 = arith.constant 0.000000e+00 : f32
    %7 = vector.broadcast %cst_4 : f32 to vector<8x2xf32>
    %8 = arith.maximumf %6, %7 : vector<8x2xf32>
    %9 = vector.extract_strided_slice %8 {offsets = [0, 0], sizes = [8, 1], strides = [1, 1]} : vector<8x2xf32> to vector<8x1xf32>
    %10 = vector.extract_strided_slice %8 {offsets = [0, 1], sizes = [8, 1], strides = [1, 1]} : vector<8x2xf32> to vector<8x1xf32>
    %11 = vector.extract_strided_slice %3 {offsets = [0, 0], sizes = [8, 127], strides = [1, 1]} : vector<8x128xf32> to vector<8x127xf32>
    %12 = tpu.concatenate %9, %11 in 1 : vector<8x1xf32>, vector<8x127xf32> -> vector<8x128xf32>
    %13 = vector.extract_strided_slice %3 {offsets = [0, 1], sizes = [8, 127], strides = [1, 1]} : vector<8x128xf32> to vector<8x127xf32>
    %14 = tpu.concatenate %13, %10 in 1 : vector<8x127xf32>, vector<8x1xf32> -> vector<8x128xf32>
    %15 = tpu.concatenate %12, %3, %14 in 0 : vector<8x128xf32>, vector<8x128xf32>, vector<8x128xf32> -> vector<24x128xf32>
    %16 = arith.truncf %15 : vector<24x128xf32> to vector<24x128xbf16>
    %c0_5 = arith.constant 0 : index
    %c0_6 = arith.constant 0 : index
    %17 = vector.load %arg4[%c0_5, %c0_6] : memref<32x24xbf16, #tpu.memory_space<vmem>>, vector<32x24xbf16>
    %cst_7 = arith.constant dense<0.000000e+00> : vector<32x128xf32>
    %18 = tpu.matmul %17, %16, %cst_7 {dimension_numbers = #tpu.dot_dimension_numbers<[1], [0], [0], [1], [0, 0, 1, 1], [], []>} : vector<32x24xbf16>, vector<24x128xbf16>, vector<32x128xf32> -> vector<32x128xf32>
    %c0_8 = arith.constant 0 : index
    %c0_9 = arith.constant 0 : index
    %19 = vector.load %arg5[%c0_8, %c0_9] : memref<32x1xf32, #tpu.memory_space<vmem>>, vector<32x1xf32>
    %20 = vector.broadcast %19 : vector<32x1xf32> to vector<32x128xf32>
    %21 = arith.addf %18, %20 : vector<32x128xf32>
    %cst_10 = arith.constant 0.000000e+00 : f32
    %22 = vector.broadcast %cst_10 : f32 to vector<32x128xf32>
    %23 = arith.maximumf %21, %22 : vector<32x128xf32>
    %24 = arith.truncf %23 : vector<32x128xf32> to vector<32x128xbf16>
    %c0_11 = arith.constant 0 : index
    %c0_12 = arith.constant 0 : index
    %25 = vector.load %arg6[%c0_11, %c0_12] : memref<8x32xbf16, #tpu.memory_space<vmem>>, vector<8x32xbf16>
    %cst_13 = arith.constant dense<0.000000e+00> : vector<8x128xf32>
    %26 = tpu.matmul %25, %24, %cst_13 {dimension_numbers = #tpu.dot_dimension_numbers<[1], [0], [0], [1], [0, 0, 1, 1], [], []>} : vector<8x32xbf16>, vector<32x128xbf16>, vector<8x128xf32> -> vector<8x128xf32>
    %c0_14 = arith.constant 0 : index
    %c0_15 = arith.constant 0 : index
    %27 = vector.load %arg7[%c0_14, %c0_15] : memref<8x1xf32, #tpu.memory_space<vmem>>, vector<8x1xf32>
    %28 = vector.broadcast %27 : vector<8x1xf32> to vector<8x128xf32>
    %29 = arith.addf %26, %28 : vector<8x128xf32>
    %30 = arith.addf %1, %29 : vector<8x128xf32>
    %c0_16 = arith.constant 0 : index
    %c0_17 = arith.constant 0 : index
    %c0_18 = arith.constant 0 : index
    %31 = vector.load %arg8[%c0_16, %c0_17, %c0_18] : memref<1x8x128xf32, #tpu.memory_space<vmem>>, vector<1x8x128xf32>
    %32 = vector.shape_cast %31 : vector<1x8x128xf32> to vector<8x128xf32>
    %33 = vector.shape_cast %30 : vector<8x128xf32> to vector<1x8x128xf32>
    tpu.vector_store %arg8[%c0_16, %c0_17, %c0_18], %33 {strides = array<i32>} : memref<1x8x128xf32, #tpu.memory_space<vmem>>, vector<1x8x128xf32>,
    return
  }
  func.func @transform_0(%arg0: i32, %arg1: i32) -> (i32, i32, i32) {
    %c0_i32 = arith.constant 0 : i32
    %c0_i32_0 = arith.constant 0 : i32
    return %arg0, %c0_i32, %arg1 : i32, i32, i32
  }
  func.func @transform_1(%arg0: i32, %arg1: i32) -> (i32, i32, i32) {
    %c0_i32 = arith.constant 0 : i32
    %c0_i32_0 = arith.constant 0 : i32
    %c0_i32_1 = arith.constant 0 : i32
    return %arg0, %c0_i32, %c0_i32_0 : i32, i32, i32
  }
  func.func @transform_2(%arg0: i32, %arg1: i32) -> (i32, i32) {
    %c0_i32 = arith.constant 0 : i32
    %c0_i32_0 = arith.constant 0 : i32
    %c0_i32_1 = arith.constant 0 : i32
    return %c0_i32, %c0_i32_0 : i32, i32
  }
  func.func @transform_3(%arg0: i32, %arg1: i32) -> (i32, i32) {
    %c0_i32 = arith.constant 0 : i32
    %c0_i32_0 = arith.constant 0 : i32
    %c0_i32_1 = arith.constant 0 : i32
    return %c0_i32, %c0_i32_0 : i32, i32
  }
  func.func @transform_4(%arg0: i32, %arg1: i32) -> (i32, i32) {
    %c0_i32 = arith.constant 0 : i32
    %c0_i32_0 = arith.constant 0 : i32
    %c0_i32_1 = arith.constant 0 : i32
    return %c0_i32, %c0_i32_0 : i32, i32
  }
  func.func @transform_5(%arg0: i32, %arg1: i32) -> (i32, i32) {
    %c0_i32 = arith.constant 0 : i32
    %c0_i32_0 = arith.constant 0 : i32
    %c0_i32_1 = arith.constant 0 : i32
    return %c0_i32, %c0_i32_0 : i32, i32
  }
  func.func @transform_6(%arg0: i32, %arg1: i32) -> (i32, i32, i32) {
    %c0_i32 = arith.constant 0 : i32
    %c0_i32_0 = arith.constant 0 : i32
    return %arg0, %c0_i32, %arg1 : i32, i32, i32
  }
}

</mosaic_0001>

<bundles_post_ra>
// kernel: tpu_custom_call.1
= control target key start
LH: loop header
LB: loop body
LE: loop exit
PB: predicated region body
PF: predicated region fallthrough
CT: control target
= control target key end

     0   :  { %11 = vsyncpa [#allocation3], 0  ;;  %s1026_s0 = inlined_call_operand.vmem [shape: f32[2,8,256], index: 0, kind: input, shape index: {}]   ;;  %s1027_s1 = inlined_call_operand.vmem [shape: f32[4,8,2], index: 1, kind: input, shape index: {}]   ;;  %s1028_s2 = inlined_call_operand.vmem [shape: bf16[32,24], index: 2, kind: input, shape index: {}]   ;;  %s1029_s3 = inlined_call_operand.vmem [shape: f32[32,1], index: 3, kind: input, shape index: {}]   ;;  %s1030_s4 = inlined_call_operand.vmem [shape: bf16[8,32], index: 4, kind: input, shape index: {}]   ;;  %s1031_s5 = inlined_call_operand.vmem [shape: f32[8,1], index: 5, kind: input, shape index: {}]   ;;  %s1032_s6 = inlined_call_operand.hbm [shape: f32[2,8,256], index: 6, kind: output, shape index: {}]  }
   0x1   :  { %13 = vsyncpa [#allocation3 + $0x1], 0  ;;  %s850_s21 = smov 0   ;;  %s852_s22 = smov 0  }
   0x2   :  { %s854_s23 = smov 0   ;;  %s856_s24 = smov 0  }
   0x3   :  { %s858_s25 = smov 0   ;;  %s860_s26 = smov 0  }
   0x4   :  { %s862_s27 = smov 0   ;;  %s864_s28 = smov 0  }
   0x5 LB: > { %s586_s29 = sadd.s32 4294967295, %s806_s28   ;;  %s587_s30 = sadd.s32 4294967294, %s806_s28   ;;  %s806_s28 = sphi %s864_s28, %s19_s28   ;;  %s802_s27 = sphi %s862_s27, %s1044_s27   ;;  %s798_s26 = sphi %s860_s26, %s1043_s26   ;;  %s794_s25 = sphi %s858_s25, %s1042_s25   ;;  %s790_s24 = sphi %s856_s24, %s1041_s24   ;;  %s786_s23 = sphi %s854_s23, %s1040_s23   ;;  %s782_s22 = sphi %s852_s22, %s1039_s22   ;;  %s778_s21 = sphi %s850_s21, %s1038_s21  }
   0x6   : > { %s28_s7 = sadd.s32 1, %s798_s26  ;;  %s31_s8 = sadd.s32 1, %s802_s27 }
   0x7   : > { %p29_p0 = scmp.ge.s32.totalorder %s28_s7, 2  ;;  %p188_p1 = scmp.ne.s32.totalorder %s786_s23, %s782_s22 }
   0x8   : > { %p189_p2 = scmp.eq.s32.totalorder %s586_s29, 3  ;;  %p194_p5 = scmp.ne.s32.totalorder %s782_s22, %s778_s21 }
   0x9   : > { %s1046_s7 = smov (%p29_p0, %s28_s7), 0  ;;  %s1048_s8 = smov (!%p29_p0, %s31_s8), %s802_s27 }
   0xa   : > { %s174_s9 = ssub.s32 %s798_s26, %s1046_s7  ;;  %p901_p3 = por %p189_p2, %p188_p1 }
   0xb   : > { %p33_p4 = scmp.ge.s32.totalorder %s1048_s8, 2  ;;  %p195_p6 = scmp.eq.s32.totalorder %s587_s30, 3 }
   0xc   : > { %p590_p7 = scmp.ge.s32.totalorder %s806_s28, 1  ;;  %p245_p9 = scmp.lt.s32.totalorder %s806_s28, 5 }
   0xd   : > { %s1050_s8 = smov (%p33_p4, %s1048_s8), 0  ;;  %p910_p8 = por %p195_p6, %p194_p5 }
   0xe   : > { %1035 = sst [smem:[#allocation5_spill]] %s1050_s8  ;;  %s173_s12 = ssub.s32 %s802_s27, %s1050_s8 }
   0xf   : > { %s178_s13 = sadd.s32 1, %s786_s23  ;;  %s175_s14 = sor.u32 %s174_s9, %s173_s12 }
  0x10   : > { %p246_p10 = pnand %p590_p7, %p245_p9  ;;  %p176_p11 = scmp.eq.s32.totalorder %s175_s14, 0 }
  0x11   : > { %p283_p12 = scmp.lt.s32.totalorder (!%p246_p10), %s794_s25, 1  ;;  %p285_p13 = scmp.lt.s32.totalorder (!%p246_p10), %s790_s24, 1  ;;  %v710_v0 = vld [vmem:[%s1028_s2] sm:$0xff] (!%p246_p10)   ;;  %vm359_vm0 = vcmask (!%p246_p10), 195584   ;;  %v809_v3 = vmov (!%p246_p10), 0   ;;  %v326_v6 = vld [vmem:[%s1029_s3 + $0x8] sm:$0xff] (!%p246_p10) }
  0x12   : > { %s919_s15 = scalar_select %p176_p11, %s786_s23, %s178_s13  }
  0x13   : > { %249 = sbr.rel (%p246_p10) target bundleno = 620 (0x26c), region = 44  ;;  %s924_s16 = sshll.u32 (!%p246_p10), %s794_s25, 1  ;;  %618 = vmatprep.mubr.msk.bf16.mxu0 (!%p246_p10), %vm359_vm0, %v710_v0  ;;  %708 = vset.pattern.permute.xlu1 (!%p246_p10), %v809_v3  ;;  %v325_v7 = vld [vmem:[%s1029_s3] sm:$0xff] (!%p246_p10)  ;;  %v327_v9 = vld [vmem:[%s1029_s3 + $0x10] sm:$0xff] (!%p246_p10)  ;;  %v328_v10 = vld [vmem:[%s1029_s3 + $0x18] sm:$0xff] (!%p246_p10)  ;;  %vm308_vm1 = vcmask (!%p246_p10), 7168  }
  0x14   : > { %p292_p0 = scmp.lt.s32.totalorder (!%p246_p10), %s924_s16, 3  ;;  %s596_s8 = sshll.u32 (!%p246_p10), %s790_s24, 3  ;;  %709 = vset.pattern.permute.xlu0 (!%p246_p10), %v809_v3  ;;  %v426_v8 = vld [vmem:[%s1031_s5] sm:$0xff] (!%p246_p10)  ;;  %vm317_vm2 = vcmask (!%p246_p10), 1039360   ;;  %vm366_vm3 = vcmask (!%p246_p10), 1043456   ;;  %v711_v19 = vld [vmem:[%s1028_s2 + $0x8] sm:$0xff] (!%p246_p10)  }
  0x15   : > { %s810_s30 = smov (!%p246_p10), 127   ;;  %v812_v20 = vmov (!%p246_p10), 0.0   ;;  %vm813_vm4 = vmmov (!%p246_p10), 0   ;;  %v425_v39 = vld [vmem:[%s1030_s4] sm:$0xf] (!%p246_p10)  ;;  %vm432_vm5 = vcmask (!%p246_p10), 261120  }
  0x16   : > { %622 = vmatprep.subr.bf16.mxu1 (!%p246_p10), %v812_v20  ;;  %626 = vmatprep.mubr.msk.bf16.mxu1 (!%p246_p10), %vm813_vm4, %v812_v20 }
  0x1a   : > { %s1052_s25 = smov (!%p283_p12, %s794_s25), 1 }
  0x1b   : > { %s286_s17 = scalar_select %p285_p13, %s790_s24, 1 }
  0x1c   : > { %s592_s18 = sshll.u32 %s1052_s25, 1 }
  0x1d   : > { %s288_s19 = sadd.s32 %s592_s18, %s286_s17  ;;  %s808_s17 = smov 1  }
  0x1e   : > { %s593_s20 = sshll.u32 %s288_s19, 3 }
  0x1f   : > { %s290_s9 = scalar_lea.vmem %s1026_s0, %s593_s20 }
  0x20   : > { %v935_v1 = vld [vmem:[%s290_s9] sm:$0xff]  ;;  %s293_s14 = scalar_select %p292_p0, %s924_s16, 3 }
  0x21   : > { %v299_v2 = vmax.f32 %v935_v1, 0.0  ;;  %s811_s9 = smov 126  }
  0x22   : > { %s595_s25 = sshll.u32 %s293_s14, 3  ;;  %s280_s14 = sand.u32 1, %s782_s22  }
  0x23   : > { %305 = vrot.lane.b32.xlu0 %v299_v2, %s808_s17  ;;  %s295_s20 = scalar_lea.vmem %s1027_s1, %s595_s25  ;;  %s591_s17 = sshll.u32 %s280_s14, 3 }
  0x24   : > { %s301_s29 = scalar_lea.vmem %s295_s20, %s596_s8  ;;  %s490_s25 = sadd.s32 %s790_s24, %s924_s16 }
  0x25   : > { %v302_v4 = vld [vmem:[%s301_s29] sm:$0xff]  ;;  %s604_s18 = sshll.u32 %s490_s25, 7  ;;  %s282_s8 = scalar_lea.vmem [#allocation2], %s591_s17 }
  0x26   : > { %v303_v5 = vmax.f32 %v302_v4, 0.0  ;;  %s494_s19 = sshll.u32 %s282_s8, 4  ;;  %s479_s24 = scalar_lea.sflag [#allocation3], %s280_s14  ;;  %s975_s19 = int_to_ptr.vmem [resolvable:$true] %s494_s19 }
  0x27   : > { %310 = vrot.lane.b32.xlu0 %v299_v2, %s810_s30  ;;  %s973_s30 = scalar_lea.hbm %s1032_s6, %s604_s18  ;;  %s712_s16 = scalar_lea.vmem %s975_s19, 128 }
  0x28   : > { %314 = vrot.lane.b32.xlu1 %v303_v5, %s811_s9  ;;  %p713_p1 = scmp.ne.s32.totalorder %s975_s19, %s712_s16  ;;  %s814_s9 = smov [#allocation2]  }
  0x29   : > { %s716_s12 = sshll.u32 %s814_s9, 4  ;;  %s717_s12 = int_to_ptr.vmem [resolvable:$false] %s716_s12 }
  0x2a   : > { %p714_p2 = pnand %p713_p1, %p901_p3  ;;  %s718_s13 = scalar_lea.vmem %s717_s12, 256 }
  0x2b   : > { %336 = vperm.xlu0 %709, %v326_v6   ;;  %p719_p5 = scmp.lt.s32.totalorder %s975_s19, %s717_s12  ;;  %p720_p6 = scmp.lt.s32.totalorder %s718_s13, %s712_s16 }
  0x2c   : > { %331 = vperm.xlu1 %708, %v325_v7   ;;  %p715_p4 = pneg %p714_p2 }
  0x2d   : > { %p721_p7 = por %p720_p6, %p719_p5 }
  0x2f   : > { %429 = vperm.xlu0 %709, %v426_v8   ;;  %p722_p9 = pnand %p721_p7, %p715_p4 }
  0x30   : > { %341 = vperm.xlu1 %708, %v327_v9  }
  0x34   : > { %346 = vperm.xlu1 %708, %v328_v10  }
  0x95   : > { %v306_v11 = vpop.permute.xlu0 %305 }
  0x96   : > { %v309_v12 = vsel %vm308_vm1, %v303_v5, %v306_v11 }
  0x97   : > { %v319_v13 = vpack.c.bf16 %v299_v2, %v309_v12 }
  0x99   : > { %614 = vmatprep.subr.bf16.mxu0 %v319_v13  ;;  %v311_v14 = vpop.permute.xlu0 %310 }
  0x9a   : > { %v315_v15 = vpop.permute.xlu1 %314  ;;  %615 = vmatpush3.bf16.msra.mxu0 %v319_v13 }
  0x9b   : > { %v318_v16 = vsel %vm317_vm2, %v311_v14, %v315_v15 }
  0x9c   : > { %v320_v17 = vpack.c.bf16 %v318_v16, %v318_v16 }
  0x9e   : > { %630 = vmatprep.subr.msk.bf16.mxu0 %vm366_vm3, %v320_v17  ;;  %v368_v18 = vsel %vm366_vm3, %v320_v17, 0 }
  0x9f   : > { %617 = vmatpush3.bf16.msra.mxu0 %v368_v18 }
  0xa2   : > { %619 = vmatmul.mubr.msk.bf16.vlgmr.msra.gmra.mrb[0].mxu0 %vm359_vm0, %v711_v19 }
  0xaa   : > { %v337_v29 = vpop.permute.xlu0 %336 }
  0xab   : > { %v332_v21 = vpop.permute.xlu1 %331 }
  0xae   : > { %v430_v40 = vpop.permute.xlu0 %429 }
  0xaf   : > { %v342_v22 = vpop.permute.xlu1 %341 }
  0xb3   : > { %v347_v26 = vpop.permute.xlu1 %346 }
 0x175   : > { %v620_v23 = vpop.f32.mrb[0].mxu0 }
 0x176   : > { %v413_v24 = vadd.f32 %v620_v23, %v342_v22  ;;  %v404_v25 = vpop.f32.mrb[1].mxu0 }
 0x177   : > { %v405_v27 = vadd.f32 %v404_v25, %v332_v21  ;;  %v621_v28 = vpop.f32.mrb[2].mxu0 }
 0x178   : > { %v416_v30 = vadd.f32 %v621_v28, %v347_v26  ;;  %v407_v31 = vpop.f32.mrb[3].mxu0  ;;  %v421_v33 = vmax.f32 %v413_v24, 0.0 }
 0x179   : > { %v408_v32 = vadd.f32 %v407_v31, %v337_v29  ;;  %v419_v35 = vmax.f32 %v405_v27, 0.0 }
 0x17a   : > { %v422_v34 = vmax.f32 %v416_v30, 0.0 }
 0x17b   : > { %v420_v36 = vmax.f32 %v408_v32, 0.0 }
 0x17c   : > { %v424_v37 = vpack.c.bf16 %v422_v34, %v421_v33 }
 0x17d   : > { %v423_v38 = vpack.c.bf16 %v420_v36, %v419_v35 }
 0x17f   : > { %623 = vmatpush3.bf16.msra.mxu1 %v423_v38 }
 0x180   : > { %624 = vmatprep.subr.bf16.mxu1 %v812_v20 }
 0x183   : > { %625 = vmatpush3.bf16.msra.mxu1 %v424_v37 }
 0x186   : > { %627 = vmatmul.mubr.msk.bf16.vlgmr.msra.gmra.mrb[0].mxu1 %vm432_vm5, %v425_v39 }
 0x259   : > { %v470_v41 = vpop.f32.mrb[0].mxu1 }
 0x25a   : > { %v471_v42 = vadd.f32 %v470_v41, %v430_v40  ;;  %v628_v43 = vpop.f32.mrb[1].mxu1 }
 0x25b   : > { %v473_v44 = vpop.f32.mrb[2].mxu1 }
 0x25c   : > { %v476_v45 = vadd.f32 %v471_v42, %v935_v1  ;;  %v629_v46 = vpop.f32.mrb[3].mxu1 }
 0x25e   : > { %477 = vst [vmem:[%s282_s8] sm:$0xff] %v476_v45 }
 0x25f   : > { %725 = shalt.err (!%p722_p9)
}
 0x260   : > { %s726_s14 = scalar_lea.hbm %s973_s30, 128  ;;  %s730_s18 = scalar_lea.hbm %s1032_s6, 512 }
 0x261   : > { %p727_p10 = scmp.ne.s32.totalorder %s973_s30, %s726_s14  ;;  %p731_p13 = scmp.lt.u32.totalorder %s973_s30, %s1032_s6 }
 0x262   : > { %p732_p0 = scmp.lt.u32.totalorder %s730_s18, %s726_s14  ;;  %p734_p2 = scmp.lt.u32.totalorder %s726_s14, %s973_s30 }
 0x263   : > { %p728_p11 = pnand %p727_p10, %p901_p3 }
 0x264   : > { %p733_p1 = por %p732_p0, %p731_p13 }
 0x265   : > { %p729_p12 = pneg %p728_p11 }
 0x266   : > { %p735_p4 = por %p734_p2, %p733_p1 }
 0x268   : > { %p736_p5 = pnand %p735_p4, %p729_p12 }
 0x26a   : > { %739 = shalt.err (!%p736_p5)
}
 0x26b   : > { %631 = dma.vmem_to_hbm [thread:$0]  (%p901_p3), %s975_s19, 128, %s973_s30, %s479_s24  }
 0x26c PF: > { %p637_p6 = scmp.ge.s32.totalorder %s806_s28, 2  ;;  %s506_s29 = sand.u32 1, %s778_s21  }
 0x26d   : > { %s507_s16 = scalar_lea.sflag [#allocation3], %s506_s29 }
 0x26e   : > { %p634_p7 = pnand %p637_p6, %p910_p8 }
 0x270   : > { %773 = dma.done.wait (!%p634_p7), %s507_s16, 128  }
 0x271   : > { %775 = vsyncadd (!%p634_p7), %s507_s16, 4294967168  ;;  %s19_s28 = sadd.s32 1, %s806_s28   ;;  %s1037_s10 = sld [smem:[#allocation5_spill]] }
 0x272   : > { %p16_p9 = scmp.ge.s32.totalorder %s19_s28, 6   ;;  %s1038_s21 = smov %s782_s22 }
 0x273   : > { %s1039_s22 = smov %s786_s23  ;;  %s1040_s23 = smov %s919_s15 }
 0x274   : > { %s1041_s24 = smov %s798_s26  ;;  %s1042_s25 = smov %s802_s27 }
 0x275   : > { %s1043_s26 = smov %s1046_s7  ;;  %18 = sbr.rel (!%p16_p9) target bundleno = 5 (0x5), region = 83 }
 0x277   : > { %s1044_s27 = smov %s1037_s10 }
 0x27c   :  { %512 = vsyncpa [#allocation3], 1 }
 0x27d   :  { %514 = vsyncpa [#allocation3 + $0x1], 1 }

</bundles_post_ra>
